<compile_context>
chip_gen: v5e
topology: v5e:2x2
jax: 0.10.0
libtpu: 0.0.40
codegen_flags: <defaults>
</compile_context>

<pallas_src>
import functools

import jax
import jax.numpy as jnp
from jax import lax
from jax.experimental import pallas as pl
from jax.experimental.pallas import tpu as pltpu

# loss hyper-parameters (module defaults; config fallbacks from __init__)
HUBER_DELTA = 0.5
EPS = 1e-8
EPS_SQ = EPS * EPS       # rsqrt(sum_sq + EPS_SQ) ~= 1 / (||v|| + EPS)
SI_ALPHA = 0.5
HUBER_W = 0.4            # getattr(config, 'HUBER_WEIGHT', 0.4)
WEIGHTED_W = 0.2         # getattr(config, 'WEIGHTED_WEIGHT', 0.2)
SCALE_INV_W = 0.1        # getattr(config, 'SCALE_INV_WEIGHT', 0.1)
SCALE_NORM_W = 0.4
GEOM_W = 0.2

SUB = 8                  # sublanes per vreg row group
MAX_LANES = 16384        # lane width cap per block: 2 arrays x 3 bufs x 1.5 MiB
                         # + ~10 MiB of (8,TL) temporaries stays well under the
                         # 32 MiB scoped-VMEM cap that is v7x-safe.


def _round_up(x, m):
    return ((x + m - 1) // m) * m


def _partials_kernel(pred_ref, gt_ref, out_ref, *,
                     c_sq_xy, c_sq_z, c_dd, c_dir, c_scl, c_geo):
    """One independent grid step: (3, 8, TL) block -> 3 merged partial sums."""
    # Component on the leading axis; batch packed densely on the (8, TL) tile.
    px, py, pz = pred_ref[0], pred_ref[1], pred_ref[2]     # (8, TL) each
    gx, gy, gz = gt_ref[0], gt_ref[1], gt_ref[2]

    # ---- HuberTranslationLoss(delta=0.5) ----
    def _huber(d):
        a = jnp.abs(d)
        return jnp.where(a <= HUBER_DELTA, 0.5 * d * d,
                         HUBER_DELTA * (a - 0.5 * HUBER_DELTA))

    dx, dy, dz = px - gx, py - gy, pz - gz
    sqx, sqy, sqz = dx * dx, dy * dy, dz * dz
    huber2 = _huber(dx) + _huber(dy) + _huber(dz)
    out_ref[0, 0] = jnp.sum(huber2)                 # reported huber partial

    # ---- ScaleInvariant log-diff: one log of the ratio per element ----
    ldx = jnp.log((jnp.abs(px) + EPS) / (jnp.abs(gx) + EPS))
    ldy = jnp.log((jnp.abs(py) + EPS) / (jnp.abs(gy) + EPS))
    ldz = jnp.log((jnp.abs(pz) + EPS) / (jnp.abs(gz) + EPS))
    out_ref[0, 1] = jnp.sum(ldx + ldy + ldz)        # sum(d) (for mean(d)^2)
    dd2 = ldx * ldx + ldy * ldy + ldz * ldz

    # ---- per-sample L2 magnitudes via rsqrt (no sqrt + exact reciprocal) ----
    ps = px * px + py * py + pz * pz                # (8, TL)
    gs = gx * gx + gy * gy + gz * gz
    inv_p = lax.rsqrt(ps + EPS_SQ)                  # ~ 1 / (||p|| + eps)
    inv_g = lax.rsqrt(gs + EPS_SQ)
    p_mag = ps * inv_p                              # ~ ||p||
    g_mag = gs * inv_g

    dnx = px * inv_p - gx * inv_g                   # normalized-direction diff
    dny = py * inv_p - gy * inv_g
    dnz = pz * inv_p - gz * inv_g
    dir2 = dnx * dnx + dny * dny + dnz * dnz

    rd = p_mag * inv_g - 1.0                        # padded samples give -1

    # ---- merged linear partial: all constant loss weights folded in ----
    lin2 = (c_sq_xy * (sqx + sqy) + c_sq_z * sqz
            + c_dd * dd2 + c_dir * dir2
            + c_scl * (rd * rd)
            + c_geo * (jnp.abs(py) + jnp.abs(p_mag - g_mag)))
    out_ref[0, 2] = jnp.sum(lin2)


@jax.jit
def robust_translation_only_loss(pred_rotation, pred_translation,
                                 gt_rotation, gt_translation):
    """Mirrors RobustTranslationOnlyLoss.forward; rotations are ignored."""
    del pred_rotation, gt_rotation  # ignored by the reference module

    pred = pred_translation.astype(jnp.float32)
    gt = gt_translation.astype(jnp.float32)
    batch = pred.shape[0]

    # ---- packed (8,128)-dense layout: (B, 3) -> (3, 8, L_total), one fused pass
    lanes_needed = -(-batch // SUB)
    tl = min(_round_up(max(lanes_needed, 1), 128), MAX_LANES)
    n_blk = -(-batch // (SUB * tl))
    l_total = n_blk * tl
    b_pad = SUB * l_total

    def pack(x):
        xp = jnp.pad(x, ((0, b_pad - batch), (0, 0)))          # (B_pad, 3)
        return jnp.transpose(xp.reshape(SUB, l_total, 3), (2, 0, 1))

    pred_pk = pack(pred)                                        # (3, 8, L_total)
    gt_pk = pack(gt)

    # constant per-element coefficients (batch is static under jit)
    n3 = 3.0 * batch
    nb = float(batch)
    c_sq_xy = (WEIGHTED_W * 1.0 + 0.1 * SCALE_INV_W) / n3   # weighted + direct MSE
    c_sq_z = (WEIGHTED_W * 2.0 + 0.1 * SCALE_INV_W) / n3    # z-axis weight = 2
    c_dd = SCALE_INV_W / n3
    c_dir = SCALE_NORM_W / n3
    c_scl = 0.1 * SCALE_NORM_W / nb
    c_geo = 0.5 * GEOM_W / nb

    kernel = functools.partial(
        _partials_kernel,
        c_sq_xy=c_sq_xy, c_sq_z=c_sq_z, c_dd=c_dd,
        c_dir=c_dir, c_scl=c_scl, c_geo=c_geo)

    in_block = (3, SUB, tl)
    in_map = lambda i: (0, 0, i)
    if n_blk > 2:
        # deeper prefetch only when there is actually a multi-block pipeline
        in_spec = pl.BlockSpec(in_block, in_map, pipeline_mode=pl.Buffered(3))
    else:
        in_spec = pl.BlockSpec(in_block, in_map)

    parts = pl.pallas_call(
        kernel,
        out_shape=jax.ShapeDtypeStruct((n_blk, 3), jnp.float32),
        grid=(n_blk,),
        in_specs=[in_spec, in_spec],
        out_specs=pl.BlockSpec((1, 3), lambda i: (i, 0),
                               memory_space=pltpu.MemorySpace.SMEM),
        compiler_params=pltpu.CompilerParams(
            # every grid step is independent (own in/out blocks, no scratch)
            # -> safe to shard across both TensorCores on v7x
            dimension_semantics=("parallel",),
            vmem_limit_bytes=32 * 1024 * 1024),
    )(pred_pk, gt_pk)

    # ---- tiny final combination in the wrapper (keeps the grid parallel) ----
    sums = jnp.sum(parts, axis=0)                               # (3,)
    s_huber, s_d, s_lin = sums[0], sums[1], sums[2]
    # every zero-padded sample contributes exactly c_scl * (0 - 1)^2 to s_lin
    s_lin = s_lin - c_scl * float(b_pad - batch)

    huber = s_huber / n3
    mean_d = s_d / n3
    total = HUBER_W * huber - (SCALE_INV_W * SI_ALPHA) * mean_d * mean_d + s_lin

    zero = jnp.float32(0.0)
    return total, huber, zero, zero


def _reference(pred, gt):
    """Pure-jnp mirror of the PyTorch module (for a sanity check)."""
    diff = pred - gt
    abs_diff = jnp.abs(diff)
    huber = jnp.mean(jnp.where(abs_diff <= HUBER_DELTA, 0.5 * diff * diff,
                               HUBER_DELTA * (abs_diff - 0.5 * HUBER_DELTA)))
    w = jnp.array([1.0, 1.0, 2.0], jnp.float32)
    weighted = jnp.mean(diff * diff * w)
    d = jnp.log(jnp.abs(pred) + EPS) - jnp.log(jnp.abs(gt) + EPS)
    scale_inv = (jnp.mean(d * d) - SI_ALPHA * jnp.mean(d) ** 2
                 + 0.1 * jnp.mean(diff * diff))
    pm = jnp.sqrt(jnp.sum(pred * pred, axis=1, keepdims=True))
    gm = jnp.sqrt(jnp.sum(gt * gt, axis=1, keepdims=True))
    pn = pred / (pm + EPS)
    gn = gt / (gm + EPS)
    scale_norm = (jnp.mean((pn - gn) ** 2)
                  + 0.1 * jnp.mean((pm / (gm + EPS) - 1.0) ** 2))
    geom = (0.5 * jnp.mean(jnp.abs(pred[:, 1]))
            + 0.5 * jnp.mean(jnp.abs(pm[:, 0] - gm[:, 0])))
    total = (HUBER_W * huber + WEIGHTED_W * weighted + SCALE_INV_W * scale_inv
             + SCALE_NORM_W * scale_norm + GEOM_W * geom)
    return total, huber


if __name__ == "__main__":
    key = jax.random.PRNGKey(0)
    k1, k2, k3, k4 = jax.random.split(key, 4)
    B = 8
    pred_rot = jax.random.normal(k1, (B, 4), dtype=jnp.float32)   # ignored
    pred_trans = jax.random.normal(k2, (B, 3), dtype=jnp.float32)
    gt_rot = jax.random.normal(k3, (B, 4), dtype=jnp.float32)     # ignored
    gt_trans = jax.random.normal(k4, (B, 3), dtype=jnp.float32)

    outs = robust_translation_only_loss(pred_rot, pred_trans, gt_rot, gt_trans)
    outs = jax.block_until_ready(outs)

    # correctness check against the pure-jnp reference
    ref_total, ref_huber = _reference(pred_trans, gt_trans)
    assert jnp.allclose(outs[0], ref_total, rtol=1e-3, atol=1e-4)
    assert jnp.allclose(outs[1], ref_huber, rtol=1e-3, atol=1e-4)
    assert float(outs[2]) == 0.0 and float(outs[3]) == 0.0

    # second check: batch not a multiple of 8 or 128 (exercises padding path)
    B2 = 517
    p2 = jax.random.normal(jax.random.PRNGKey(1), (B2, 3), dtype=jnp.float32)
    g2 = jax.random.normal(jax.random.PRNGKey(2), (B2, 3), dtype=jnp.float32)
    r2 = jnp.zeros((B2, 4), jnp.float32)
    o2 = jax.block_until_ready(robust_translation_only_loss(r2, p2, r2, g2))
    rt2, rh2 = _reference(p2, g2)
    assert jnp.allclose(o2[0], rt2, rtol=1e-3, atol=1e-4)
    assert jnp.allclose(o2[1], rh2, rtol=1e-3, atol=1e-4)

    print("KERNEL_OK")
</pallas_src>

<mosaic_0001>
module attributes {stable_mosaic.version = 11 : i64} {
  func.func @_partials_kernel(%arg0: i32, %arg1: memref<3x8x128xf32, #tpu.memory_space<vmem>>, %arg2: memref<3x8x128xf32, #tpu.memory_space<vmem>>, %arg3: memref<1x3xf32, #tpu.memory_space<smem>>) attributes {dimension_semantics = [#tpu.dimension_semantics<parallel>], iteration_bounds = array<i64: 1>, scalar_prefetch = 0 : i64, scratch_operands = 0 : i64, tpu.core_type = #tpu.core_type<tc>, window_params = [{transform_indices = @transform_0, window_bounds = array<i64: 3, 8, 128>}, {transform_indices = @transform_1, window_bounds = array<i64: 3, 8, 128>}, {transform_indices = @transform_2, window_bounds = array<i64: 1, 3>}]} {
    %c0 = arith.constant 0 : index
    %c0_0 = arith.constant 0 : index
    %c0_1 = arith.constant 0 : index
    %0 = vector.load %arg1[%c0, %c0_0, %c0_1] : memref<3x8x128xf32, #tpu.memory_space<vmem>>, vector<1x8x128xf32>
    %1 = vector.shape_cast %0 : vector<1x8x128xf32> to vector<8x128xf32>
    %c1 = arith.constant 1 : index
    %c0_2 = arith.constant 0 : index
    %c0_3 = arith.constant 0 : index
    %2 = vector.load %arg1[%c1, %c0_2, %c0_3] : memref<3x8x128xf32, #tpu.memory_space<vmem>>, vector<1x8x128xf32>
    %3 = vector.shape_cast %2 : vector<1x8x128xf32> to vector<8x128xf32>
    %c2 = arith.constant 2 : index
    %c0_4 = arith.constant 0 : index
    %c0_5 = arith.constant 0 : index
    %4 = vector.load %arg1[%c2, %c0_4, %c0_5] : memref<3x8x128xf32, #tpu.memory_space<vmem>>, vector<1x8x128xf32>
    %5 = vector.shape_cast %4 : vector<1x8x128xf32> to vector<8x128xf32>
    %c0_6 = arith.constant 0 : index
    %c0_7 = arith.constant 0 : index
    %c0_8 = arith.constant 0 : index
    %6 = vector.load %arg2[%c0_6, %c0_7, %c0_8] : memref<3x8x128xf32, #tpu.memory_space<vmem>>, vector<1x8x128xf32>
    %7 = vector.shape_cast %6 : vector<1x8x128xf32> to vector<8x128xf32>
    %c1_9 = arith.constant 1 : index
    %c0_10 = arith.constant 0 : index
    %c0_11 = arith.constant 0 : index
    %8 = vector.load %arg2[%c1_9, %c0_10, %c0_11] : memref<3x8x128xf32, #tpu.memory_space<vmem>>, vector<1x8x128xf32>
    %9 = vector.shape_cast %8 : vector<1x8x128xf32> to vector<8x128xf32>
    %c2_12 = arith.constant 2 : index
    %c0_13 = arith.constant 0 : index
    %c0_14 = arith.constant 0 : index
    %10 = vector.load %arg2[%c2_12, %c0_13, %c0_14] : memref<3x8x128xf32, #tpu.memory_space<vmem>>, vector<1x8x128xf32>
    %11 = vector.shape_cast %10 : vector<1x8x128xf32> to vector<8x128xf32>
    %12 = arith.subf %1, %7 : vector<8x128xf32>
    %13 = arith.subf %3, %9 : vector<8x128xf32>
    %14 = arith.subf %5, %11 : vector<8x128xf32>
    %15 = arith.mulf %12, %12 : vector<8x128xf32>
    %16 = arith.mulf %13, %13 : vector<8x128xf32>
    %17 = arith.mulf %14, %14 : vector<8x128xf32>
    %18 = math.absf %12 : vector<8x128xf32>
    %cst = arith.constant 5.000000e-01 : f32
    %19 = vector.broadcast %cst : f32 to vector<8x128xf32>
    %20 = arith.cmpf ole, %18, %19 : vector<8x128xf32>
    %cst_15 = arith.constant 5.000000e-01 : f32
    %21 = vector.broadcast %cst_15 : f32 to vector<8x128xf32>
    %22 = arith.mulf %21, %12 : vector<8x128xf32>
    %23 = arith.mulf %22, %12 : vector<8x128xf32>
    %cst_16 = arith.constant 2.500000e-01 : f32
    %24 = vector.broadcast %cst_16 : f32 to vector<8x128xf32>
    %25 = arith.subf %18, %24 : vector<8x128xf32>
    %cst_17 = arith.constant 5.000000e-01 : f32
    %26 = vector.broadcast %cst_17 : f32 to vector<8x128xf32>
    %27 = arith.mulf %26, %25 : vector<8x128xf32>
    %28 = arith.select %20, %23, %27 : vector<8x128xi1>, vector<8x128xf32>
    %29 = math.absf %13 : vector<8x128xf32>
    %cst_18 = arith.constant 5.000000e-01 : f32
    %30 = vector.broadcast %cst_18 : f32 to vector<8x128xf32>
    %31 = arith.cmpf ole, %29, %30 : vector<8x128xf32>
    %cst_19 = arith.constant 5.000000e-01 : f32
    %32 = vector.broadcast %cst_19 : f32 to vector<8x128xf32>
    %33 = arith.mulf %32, %13 : vector<8x128xf32>
    %34 = arith.mulf %33, %13 : vector<8x128xf32>
    %cst_20 = arith.constant 2.500000e-01 : f32
    %35 = vector.broadcast %cst_20 : f32 to vector<8x128xf32>
    %36 = arith.subf %29, %35 : vector<8x128xf32>
    %cst_21 = arith.constant 5.000000e-01 : f32
    %37 = vector.broadcast %cst_21 : f32 to vector<8x128xf32>
    %38 = arith.mulf %37, %36 : vector<8x128xf32>
    %39 = arith.select %31, %34, %38 : vector<8x128xi1>, vector<8x128xf32>
    %40 = arith.addf %28, %39 : vector<8x128xf32>
    %41 = math.absf %14 : vector<8x128xf32>
    %cst_22 = arith.constant 5.000000e-01 : f32
    %42 = vector.broadcast %cst_22 : f32 to vector<8x128xf32>
    %43 = arith.cmpf ole, %41, %42 : vector<8x128xf32>
    %cst_23 = arith.constant 5.000000e-01 : f32
    %44 = vector.broadcast %cst_23 : f32 to vector<8x128xf32>
    %45 = arith.mulf %44, %14 : vector<8x128xf32>
    %46 = arith.mulf %45, %14 : vector<8x128xf32>
    %cst_24 = arith.constant 2.500000e-01 : f32
    %47 = vector.broadcast %cst_24 : f32 to vector<8x128xf32>
    %48 = arith.subf %41, %47 : vector<8x128xf32>
    %cst_25 = arith.constant 5.000000e-01 : f32
    %49 = vector.broadcast %cst_25 : f32 to vector<8x128xf32>
    %50 = arith.mulf %49, %48 : vector<8x128xf32>
    %51 = arith.select %43, %46, %50 : vector<8x128xi1>, vector<8x128xf32>
    %52 = arith.addf %40, %51 : vector<8x128xf32>
    %53 = vector.shape_cast %52 : vector<8x128xf32> to vector<1x8x128xf32>
    %cst_26 = arith.constant dense<0.000000e+00> : vector<1xf32>
    %54 = vector.multi_reduction <add>, %53, %cst_26 [1, 2] : vector<1x8x128xf32> to vector<1xf32>
    %55 = vector.shape_cast %54 : vector<1xf32> to vector<1x1x1xf32>
    %56 = vector.extract %55[0, 0, 0] : f32 from vector<1x1x1xf32>
    %c0_27 = arith.constant 0 : index
    %c0_28 = arith.constant 0 : index
    %57 = memref.load %arg3[%c0_27, %c0_28] : memref<1x3xf32, #tpu.memory_space<smem>>
    memref.store %56, %arg3[%c0_27, %c0_28] : memref<1x3xf32, #tpu.memory_space<smem>>
    %58 = math.absf %1 : vector<8x128xf32>
    %cst_29 = arith.constant 9.99999993E-9 : f32
    %59 = vector.broadcast %cst_29 : f32 to vector<8x128xf32>
    %60 = arith.addf %58, %59 : vector<8x128xf32>
    %61 = math.absf %7 : vector<8x128xf32>
    %cst_30 = arith.constant 9.99999993E-9 : f32
    %62 = vector.broadcast %cst_30 : f32 to vector<8x128xf32>
    %63 = arith.addf %61, %62 : vector<8x128xf32>
    %64 = arith.divf %60, %63 : vector<8x128xf32>
    %65 = math.log %64 : vector<8x128xf32>
    %66 = math.absf %3 : vector<8x128xf32>
    %cst_31 = arith.constant 9.99999993E-9 : f32
    %67 = vector.broadcast %cst_31 : f32 to vector<8x128xf32>
    %68 = arith.addf %66, %67 : vector<8x128xf32>
    %69 = math.absf %9 : vector<8x128xf32>
    %cst_32 = arith.constant 9.99999993E-9 : f32
    %70 = vector.broadcast %cst_32 : f32 to vector<8x128xf32>
    %71 = arith.addf %69, %70 : vector<8x128xf32>
    %72 = arith.divf %68, %71 : vector<8x128xf32>
    %73 = math.log %72 : vector<8x128xf32>
    %74 = math.absf %5 : vector<8x128xf32>
    %cst_33 = arith.constant 9.99999993E-9 : f32
    %75 = vector.broadcast %cst_33 : f32 to vector<8x128xf32>
    %76 = arith.addf %74, %75 : vector<8x128xf32>
    %77 = math.absf %11 : vector<8x128xf32>
    %cst_34 = arith.constant 9.99999993E-9 : f32
    %78 = vector.broadcast %cst_34 : f32 to vector<8x128xf32>
    %79 = arith.addf %77, %78 : vector<8x128xf32>
    %80 = arith.divf %76, %79 : vector<8x128xf32>
    %81 = math.log %80 : vector<8x128xf32>
    %82 = arith.addf %65, %73 : vector<8x128xf32>
    %83 = arith.addf %82, %81 : vector<8x128xf32>
    %84 = vector.shape_cast %83 : vector<8x128xf32> to vector<1x8x128xf32>
    %cst_35 = arith.constant dense<0.000000e+00> : vector<1xf32>
    %85 = vector.multi_reduction <add>, %84, %cst_35 [1, 2] : vector<1x8x128xf32> to vector<1xf32>
    %86 = vector.shape_cast %85 : vector<1xf32> to vector<1x1x1xf32>
    %87 = vector.extract %86[0, 0, 0] : f32 from vector<1x1x1xf32>
    %c0_36 = arith.constant 0 : index
    %c1_37 = arith.constant 1 : index
    %88 = memref.load %arg3[%c0_36, %c1_37] : memref<1x3xf32, #tpu.memory_space<smem>>
    memref.store %87, %arg3[%c0_36, %c1_37] : memref<1x3xf32, #tpu.memory_space<smem>>
    %89 = arith.mulf %65, %65 : vector<8x128xf32>
    %90 = arith.mulf %73, %73 : vector<8x128xf32>
    %91 = arith.addf %89, %90 : vector<8x128xf32>
    %92 = arith.mulf %81, %81 : vector<8x128xf32>
    %93 = arith.addf %91, %92 : vector<8x128xf32>
    %94 = arith.mulf %1, %1 : vector<8x128xf32>
    %95 = arith.mulf %3, %3 : vector<8x128xf32>
    %96 = arith.addf %94, %95 : vector<8x128xf32>
    %97 = arith.mulf %5, %5 : vector<8x128xf32>
    %98 = arith.addf %96, %97 : vector<8x128xf32>
    %99 = arith.mulf %7, %7 : vector<8x128xf32>
    %100 = arith.mulf %9, %9 : vector<8x128xf32>
    %101 = arith.addf %99, %100 : vector<8x128xf32>
    %102 = arith.mulf %11, %11 : vector<8x128xf32>
    %103 = arith.addf %101, %102 : vector<8x128xf32>
    %cst_38 = arith.constant 1.000000e-16 : f32
    %104 = vector.broadcast %cst_38 : f32 to vector<8x128xf32>
    %105 = arith.addf %98, %104 : vector<8x128xf32>
    %106 = math.rsqrt %105 : vector<8x128xf32>
    %cst_39 = arith.constant 1.000000e-16 : f32
    %107 = vector.broadcast %cst_39 : f32 to vector<8x128xf32>
    %108 = arith.addf %103, %107 : vector<8x128xf32>
    %109 = math.rsqrt %108 : vector<8x128xf32>
    %110 = arith.mulf %98, %106 : vector<8x128xf32>
    %111 = arith.mulf %103, %109 : vector<8x128xf32>
    %112 = arith.mulf %1, %106 : vector<8x128xf32>
    %113 = arith.mulf %7, %109 : vector<8x128xf32>
    %114 = arith.subf %112, %113 : vector<8x128xf32>
    %115 = arith.mulf %3, %106 : vector<8x128xf32>
    %116 = arith.mulf %9, %109 : vector<8x128xf32>
    %117 = arith.subf %115, %116 : vector<8x128xf32>
    %118 = arith.mulf %5, %106 : vector<8x128xf32>
    %119 = arith.mulf %11, %109 : vector<8x128xf32>
    %120 = arith.subf %118, %119 : vector<8x128xf32>
    %121 = arith.mulf %114, %114 : vector<8x128xf32>
    %122 = arith.mulf %117, %117 : vector<8x128xf32>
    %123 = arith.addf %121, %122 : vector<8x128xf32>
    %124 = arith.mulf %120, %120 : vector<8x128xf32>
    %125 = arith.addf %123, %124 : vector<8x128xf32>
    %126 = arith.mulf %110, %109 : vector<8x128xf32>
    %cst_40 = arith.constant 1.000000e+00 : f32
    %127 = vector.broadcast %cst_40 : f32 to vector<8x128xf32>
    %128 = arith.subf %126, %127 : vector<8x128xf32>
    %129 = arith.addf %15, %16 : vector<8x128xf32>
    %cst_41 = arith.constant 8.750000e-03 : f32
    %130 = vector.broadcast %cst_41 : f32 to vector<8x128xf32>
    %131 = arith.mulf %130, %129 : vector<8x128xf32>
    %cst_42 = arith.constant 0.0170833338 : f32
    %132 = vector.broadcast %cst_42 : f32 to vector<8x128xf32>
    %133 = arith.mulf %132, %17 : vector<8x128xf32>
    %134 = arith.addf %131, %133 : vector<8x128xf32>
    %cst_43 = arith.constant 0.00416666688 : f32
    %135 = vector.broadcast %cst_43 : f32 to vector<8x128xf32>
    %136 = arith.mulf %135, %93 : vector<8x128xf32>
    %137 = arith.addf %134, %136 : vector<8x128xf32>
    %cst_44 = arith.constant 0.0166666675 : f32
    %138 = vector.broadcast %cst_44 : f32 to vector<8x128xf32>
    %139 = arith.mulf %138, %125 : vector<8x128xf32>
    %140 = arith.addf %137, %139 : vector<8x128xf32>
    %141 = arith.mulf %128, %128 : vector<8x128xf32>
    %cst_45 = arith.constant 5.000000e-03 : f32
    %142 = vector.broadcast %cst_45 : f32 to vector<8x128xf32>
    %143 = arith.mulf %142, %141 : vector<8x128xf32>
    %144 = arith.addf %140, %143 : vector<8x128xf32>
    %145 = math.absf %3 : vector<8x128xf32>
    %146 = arith.subf %110, %111 : vector<8x128xf32>
    %147 = math.absf %146 : vector<8x128xf32>
    %148 = arith.addf %145, %147 : vector<8x128xf32>
    %cst_46 = arith.constant 1.250000e-02 : f32
    %149 = vector.broadcast %cst_46 : f32 to vector<8x128xf32>
    %150 = arith.mulf %149, %148 : vector<8x128xf32>
    %151 = arith.addf %144, %150 : vector<8x128xf32>
    %152 = vector.shape_cast %151 : vector<8x128xf32> to vector<1x8x128xf32>
    %cst_47 = arith.constant dense<0.000000e+00> : vector<1xf32>
    %153 = vector.multi_reduction <add>, %152, %cst_47 [1, 2] : vector<1x8x128xf32> to vector<1xf32>
    %154 = vector.shape_cast %153 : vector<1xf32> to vector<1x1x1xf32>
    %155 = vector.extract %154[0, 0, 0] : f32 from vector<1x1x1xf32>
    %c0_48 = arith.constant 0 : index
    %c2_49 = arith.constant 2 : index
    %156 = memref.load %arg3[%c0_48, %c2_49] : memref<1x3xf32, #tpu.memory_space<smem>>
    memref.store %155, %arg3[%c0_48, %c2_49] : memref<1x3xf32, #tpu.memory_space<smem>>
    return
  }
  func.func @transform_0(%arg0: i32) -> (i32, i32, i32) {
    %c0_i32 = arith.constant 0 : i32
    %c0_i32_0 = arith.constant 0 : i32
    %c0_i32_1 = arith.constant 0 : i32
    return %c0_i32, %c0_i32_0, %arg0 : i32, i32, i32
  }
  func.func @transform_1(%arg0: i32) -> (i32, i32, i32) {
    %c0_i32 = arith.constant 0 : i32
    %c0_i32_0 = arith.constant 0 : i32
    %c0_i32_1 = arith.constant 0 : i32
    return %c0_i32, %c0_i32_0, %arg0 : i32, i32, i32
  }
  func.func @transform_2(%arg0: i32) -> (i32, i32) {
    %c0_i32 = arith.constant 0 : i32
    %c0_i32_0 = arith.constant 0 : i32
    return %arg0, %c0_i32 : i32, i32
  }
}

</mosaic_0001>

<bundles_post_ra>
// kernel: robust_translation_only_loss.1
= control target key start
LH: loop header
LB: loop body
LE: loop exit
PB: predicated region body
PF: predicated region fallthrough
CT: control target
= control target key end

     0   :  { %s428_s0 = inlined_call_operand.vmem [shape: f32[3,8,128], index: 0, kind: input, shape index: {}]   ;;  %s429_s1 = inlined_call_operand.vmem [shape: f32[3,8,128], index: 1, kind: input, shape index: {}]   ;;  %s430_s2 = inlined_call_operand.vmem [shape: f32[1,3], index: 2, kind: output, shape index: {}]  }
   0x1   :  { %v299_v0 = vld [vmem:[%s428_s0] sm:$0xff]  ;;  %v304_v1 = vld [vmem:[%s428_s0 + $0x8] sm:$0xff]  ;;  %v309_v2 = vld [vmem:[%s428_s0 + $0x10] sm:$0xff] }
   0x2   :  { %v314_v3 = vld [vmem:[%s429_s1] sm:$0xff]  ;;  %v319_v4 = vld [vmem:[%s429_s1 + $0x8] sm:$0xff]  ;;  %v324_v5 = vld [vmem:[%s429_s1 + $0x10] sm:$0xff] }
   0x3   :  { %v328_v6 = vsub.f32 %v299_v0, %v314_v3  ;;  %v332_v7 = vsub.f32 %v304_v1, %v319_v4  ;;  %v336_v8 = vsub.f32 %v309_v2, %v324_v5  ;;  %v64_v9 = vand.u32 2147483647, %v314_v3 }
   0x4   :  { %7 = vsyncpa [#allocation3], 0  ;;  %v85_v10 = vand.u32 2147483647, %v319_v4  ;;  %v106_v11 = vand.u32 2147483647, %v324_v5  ;;  %v143_v20 = vmul.f32 %v299_v0, %v299_v0  ;;  %v144_v24 = vmul.f32 %v304_v1, %v304_v1 }
   0x5   :  { %v62_v12 = vand.u32 2147483647, %v299_v0  ;;  %v28_v13 = vand.u32 2147483647, %v328_v6  ;;  %v30_v14 = vmul.f32 0.5, %v328_v6  ;;  %v37_v16 = vmul.f32 0.5, %v332_v7 }
   0x6   :  { %v35_v15 = vand.u32 2147483647, %v332_v7  ;;  %v43_v17 = vand.u32 2147483647, %v336_v8  ;;  %v45_v18 = vmul.f32 0.5, %v336_v8  ;;  %v146_v34 = vmul.f32 %v309_v2, %v309_v2  ;;  %s225_s23 = sshll.u32 %s430_s2, 4  ;;  %s226_s23 = int_to_ptr.vmem [resolvable:$true] %s225_s23 }
   0x7   :  { %v65_v19 = vadd.f32 1e-08, %v64_v9  ;;  %vm350_vm0 = vcmp.le.f32.partialorder %v28_v13, 0.5  ;;  %v31_v22 = vmul.f32 %v30_v14, %v328_v6  ;;  %v239_v23 = vadd.f32 -0.25, %v28_v13  ;;  %s280_s25 = smov [#allocation2]  }
   0x8   :  { %vm357_vm1 = vcmp.le.f32.partialorder %v35_v15, 0.5  ;;  %v38_v26 = vmul.f32 %v37_v16, %v332_v7  ;;  %v240_v27 = vadd.f32 -0.25, %v35_v15  ;;  %v46_v28 = vmul.f32 %v45_v18, %v336_v8 }
   0x9   :  { %v33_v29 = vmul.f32 0.5, %v239_v23  ;;  %v241_v30 = vadd.f32 -0.25, %v43_v17  ;;  %250 = vrcp.f32 %v65_v19  ;;  %v86_v31 = vadd.f32 1e-08, %v85_v10 }
   0xa   :  { %v40_v32 = vmul.f32 0.5, %v240_v27  ;;  %vm44_vm2 = vcmp.le.f32.partialorder %v43_v17, 0.5  ;;  %v107_v33 = vadd.f32 1e-08, %v106_v11  ;;  %v145_v37 = vadd.f32 %v144_v24, %v143_v20 }
   0xb   :  { %v34_v35 = vsel %vm350_vm0, %v31_v22, %v33_v29  ;;  %v48_v36 = vmul.f32 0.5, %v241_v30  ;;  %252 = vrcp.f32 %v86_v31  ;;  %v75_v39 = vand.u32 2147483647, %v65_v19 }
   0xc   :  { %v41_v38 = vsel %vm357_vm1, %v38_v26, %v40_v32  ;;  %254 = vrcp.f32 %v107_v33  ;;  %v77_v40 = vand.u32 2147483648, %v65_v19  ;;  %v63_v45 = vadd.f32 1e-08, %v62_v12 }
   0xd   :  { %v42_v41 = vadd.f32 %v41_v38, %v34_v35  ;;  %v49_v42 = vsel %vm44_vm2, %v46_v28, %v48_v36  ;;  %vm71_vm3 = vweird.f32 %v65_v19  ;;  %v369_v46 = vadd.f32 %v146_v34, %v145_v37 }
   0xe   :  { %vm371_vm4 = vcmp.eq.f32.partialorder %v75_v39, 8.507059e+37  ;;  %v78_v49 = vor.u32 1.1754944e-38, %v77_v40  ;;  %v83_v50 = vand.u32 2147483647, %v304_v1  ;;  %vm92_vm5 = vweird.f32 %v86_v31 }
   0xf   :  { %v251_v43 = vpop.eup %250  ;;  %v50_v44 = vadd.f32 %v49_v42, %v42_v41  ;;  %v96_v52 = vand.u32 2147483647, %v86_v31  ;;  %v98_v53 = vand.u32 2147483648, %v86_v31  ;;  %vm113_vm6 = vweird.f32 %v107_v33 }
  0x10   :  { %v67_v47 = vmul.f32 %v251_v43, %v65_v19  ;;  %vm72_vm7 = vweird.f32 %v251_v43  ;;  %v104_v57 = vand.u32 2147483647, %v309_v2  ;;  %v119_v59 = vand.u32 2147483648, %v107_v33 }
  0x11   :  { %v253_v51 = vpop.eup %252  ;;  %51 = vadd.xlane.f32.xlu0 %v50_v44  ;;  %v148_v60 = vmul.f32 %v314_v3, %v314_v3  ;;  %v149_v63 = vmul.f32 %v319_v4, %v319_v4  ;;  %v151_v9 = vmul.f32 %v324_v5, %v324_v5  ;;  %vm384_vm9 = vmor %vm71_vm3, %vm72_vm7  ;;  %v117_v12 = vand.u32 2147483647, %v107_v33 }
  0x12   :  { %v255_v54 = vpop.eup %254  ;;  %v68_v55 = vsub.f32 1.0, %v67_v47  ;;  %v88_v56 = vmul.f32 %v253_v51, %v86_v31  ;;  %vm93_vm8 = vweird.f32 %v253_v51  ;;  %v153_v13 = vadd.f32 1e-16, %v369_v46 }
  0x13   :  { %v109_v58 = vmul.f32 %v255_v54, %v107_v33  ;;  %vm114_vm10 = vweird.f32 %v255_v54  ;;  %v84_v15 = vadd.f32 1e-08, %v83_v50  ;;  %v150_v17 = vadd.f32 %v149_v63, %v148_v60  ;;  %vm393_vm11 = vmor %vm92_vm5, %vm93_vm8 }
  0x14   :  { %v69_v61 = vmul.f32 %v251_v43, %v68_v55  ;;  %v89_v62 = vsub.f32 1.0, %v88_v56  ;;  %vm397_vm12 = vcmp.eq.f32.partialorder %v96_v52, 8.507059e+37  ;;  %v99_v20 = vor.u32 1.1754944e-38, %v98_v53  ;;  %vm115_vm13 = vmor %vm113_vm6, %vm114_vm10 }
  0x15   :  { %v110_v11 = vsub.f32 1.0, %v109_v58  ;;  %256 = vrsqrt.f32 %v153_v13  ;;  %v120_v24 = vor.u32 1.1754944e-38, %v119_v59  ;;  %v152_v25 = vadd.f32 %v151_v9, %v150_v17 }
  0x16   :  { %v70_v14 = vadd.f32 %v251_v43, %v69_v61  ;;  %v90_v16 = vmul.f32 %v253_v51, %v89_v62  ;;  %v105_v27 = vadd.f32 1e-08, %v104_v57  ;;  %vm118_vm14 = vcmp.eq.f32.partialorder %v117_v12, 8.507059e+37 }
  0x17   :  { %v111_v21 = vmul.f32 %v255_v54, %v110_v11  ;;  %v164_v31 = vadd.f32 1e-16, %v152_v25  ;;  %vm160_vm15 = vweird.f32 %v153_v13  ;;  %v26_v52 = vmul.f32 %v332_v7, %v332_v7 }
  0x18   :  { %v74_v22 = vsel %vm384_vm9, %v251_v43, %v70_v14  ;;  %v91_v23 = vadd.f32 %v253_v51, %v90_v16  ;;  %v27_v61 = vmul.f32 %v336_v8, %v336_v8 }
  0x19   :  { %v79_v26 = vsel %vm371_vm4, %v78_v49, %v74_v22  ;;  %v112_v28 = vadd.f32 %v255_v54, %v111_v21  ;;  %vm171_vm2 = vweird.f32 %v164_v31 }
  0x1a   :  { %v80_v29 = vmul.f32 %v79_v26, %v63_v45  ;;  %v95_v30 = vsel %vm393_vm11, %v253_v51, %v91_v23  ;;  %v25_v51 = vmul.f32 %v328_v6, %v328_v6  ;;  %v195_v8 = vmul.f32 0.017083334, %v27_v61 }
  0x1b   :  { %v100_v32 = vsel %vm397_vm12, %v99_v20, %v95_v30  ;;  %v116_v34 = vsel %vm115_vm13, %v255_v54, %v112_v28  ;;  %v257_v36 = vpop.eup %256 }
  0x1c   :  { %258 = vlog2.f32 %v80_v29  ;;  %v101_v33 = vmul.f32 %v100_v32, %v84_v15  ;;  %v121_v35 = vsel %vm118_vm14, %v120_v24, %v116_v34  ;;  %v155_v38 = vmul.f32 %v257_v36, %v153_v13 }
  0x1d   :  { %v122_v37 = vmul.f32 %v121_v35, %v105_v27  ;;  %260 = vrsqrt.f32 %v164_v31  ;;  %vm161_vm0 = vweird.f32 %v257_v36  ;;  %v193_v62 = vadd.f32 %v26_v52, %v25_v51 }
  0x1e   :  { %262 = vlog2.f32 %v101_v33  ;;  %v156_v39 = vmul.f32 %v257_v36, %v155_v38  ;;  %vm162_vm1 = vmor %vm160_vm15, %vm161_vm0 }
  0x1f   :  { %264 = vlog2.f32 %v122_v37  ;;  %v194_v17 = vmul.f32 0.00875, %v193_v62 }
  0x20   :  { %v157_v41 = vmul.f32 0.5, %v156_v39 }
  0x21   :  { %v196_v27 = vadd.f32 %v195_v8, %v194_v17 }
  0x22   :  { %v259_v40 = vpop.eup %258  ;;  %v158_v45 = vsub.f32 1.5, %v157_v41 }
  0x23   :  { %v261_v42 = vpop.eup %260  ;;  %v82_v43 = vmul.f32 0.6931472, %v259_v40 }
  0x24   :  { %v263_v44 = vpop.eup %262  ;;  %v166_v47 = vmul.f32 %v261_v42, %v164_v31  ;;  %v159_v55 = vmul.f32 %v257_v36, %v158_v45  ;;  %vm172_vm3 = vweird.f32 %v261_v42 }
  0x25   :  { %v265_v48 = vpop.eup %264  ;;  %v103_v49 = vmul.f32 0.6931472, %v263_v44  ;;  %v138_v54 = vmul.f32 %v82_v43, %v82_v43  ;;  %vm173_vm4 = vmor %vm171_vm2, %vm172_vm3 }
  0x26   :  { %v124_v53 = vmul.f32 0.6931472, %v265_v48  ;;  %v167_v56 = vmul.f32 %v261_v42, %v166_v47  ;;  %v163_v9 = vsel %vm162_vm1, %v257_v36, %v159_v55 }
  0x27   :  { %v125_v57 = vadd.f32 %v103_v49, %v82_v43  ;;  %v139_v58 = vmul.f32 %v103_v49, %v103_v49  ;;  %v175_v11 = vmul.f32 %v163_v9, %v369_v46  ;;  %v177_v12 = vmul.f32 %v163_v9, %v299_v0 }
  0x28   :  { %v168_v59 = vmul.f32 0.5, %v167_v56  ;;  %v141_v6 = vmul.f32 %v124_v53, %v124_v53  ;;  %v180_v13 = vmul.f32 %v304_v1, %v163_v9  ;;  %v183_v14 = vmul.f32 %v309_v2, %v163_v9 }
  0x29   :  { %v126_v60 = vadd.f32 %v125_v57, %v124_v53  ;;  %v140_v63 = vadd.f32 %v139_v58, %v138_v54 }
  0x2a   :  { %v169_v10 = vsub.f32 1.5, %v168_v59 }
  0x2b   :  { %127 = vadd.xlane.f32.xlu0 %v126_v60  ;;  %v142_v15 = vadd.f32 %v141_v6, %v140_v63 }
  0x2c   :  { %v170_v7 = vmul.f32 %v261_v42, %v169_v10 }
  0x2d   :  { %v197_v28 = vmul.f32 0.004166667, %v142_v15 }
  0x2e   :  { %v174_v16 = vsel %vm173_vm4, %v261_v42, %v170_v7 }
  0x2f   :  { %v176_v18 = vmul.f32 %v174_v16, %v152_v25  ;;  %v178_v19 = vmul.f32 %v174_v16, %v314_v3  ;;  %v181_v20 = vmul.f32 %v319_v4, %v174_v16  ;;  %v184_v21 = vmul.f32 %v324_v5, %v174_v16 }
  0x30   :  { %v191_v22 = vmul.f32 %v175_v11, %v174_v16  ;;  %v198_v3 = vadd.f32 %v197_v28, %v196_v27 }
  0x31   :  { %v179_v23 = vsub.f32 %v177_v12, %v178_v19  ;;  %v182_v46 = vsub.f32 %v180_v13, %v181_v20  ;;  %v185_v24 = vsub.f32 %v183_v14, %v184_v21  ;;  %v204_v0 = vsub.f32 %v175_v11, %v176_v18 }
  0x32   :  { %v242_v26 = vadd.f32 -1.0, %v191_v22 }
  0x33   :  { %v186_v2 = vmul.f32 %v179_v23, %v179_v23  ;;  %v187_v29 = vmul.f32 %v182_v46, %v182_v46  ;;  %v189_v30 = vmul.f32 %v185_v24, %v185_v24  ;;  %v205_v31 = vand.u32 2147483647, %v204_v0 }
  0x34   :  { %v201_v25 = vmul.f32 %v242_v26, %v242_v26 }
  0x35   :  { %v188_v32 = vadd.f32 %v187_v29, %v186_v2  ;;  %v206_v4 = vadd.f32 %v205_v31, %v83_v50 }
  0x36   :  { %v202_v33 = vmul.f32 0.005, %v201_v25 }
  0x37   :  { %v190_v34 = vadd.f32 %v189_v30, %v188_v32  ;;  %v207_v36 = vmul.f32 0.0125, %v206_v4 }
  0x39   :  { %v199_v5 = vmul.f32 0.016666668, %v190_v34 }
  0x3b   :  { %v200_v35 = vadd.f32 %v199_v5, %v198_v3 }
  0x3d   :  { %v203_v37 = vadd.f32 %v202_v33, %v200_v35 }
  0x3f   :  { %v208_v38 = vadd.f32 %v207_v36, %v203_v37 }
  0x41   :  { %209 = vadd.xlane.f32.xlu1 %v208_v38 }
  0x84   :  { %v52_v39 = vpop.xlane.xlu0 %51 }
  0x85   :  { %v53_v40 = vrot.slane %v52_v39, 4 }
  0x87   :  { %v54_v41 = vadd.f32 %v53_v40, %v52_v39 }
  0x89   :  { %v55_v42 = vrot.slane %v54_v41, 2 }
  0x8b   :  { %v56_v43 = vadd.f32 %v55_v42, %v54_v41 }
  0x8d   :  { %v57_v44 = vrot.slane %v56_v43, 1 }
  0x8f   :  { %v58_v45 = vadd.f32 %v57_v44, %v56_v43 }
  0x91   :  { %243 = vpush %v58_v45 }
  0x9e   :  { %v128_v47 = vpop.xlane.xlu0 %127 }
  0x9f   :  { %v129_v48 = vrot.slane %v128_v47, 4 }
  0xa1   :  { %v130_v49 = vadd.f32 %v129_v48, %v128_v47 }
  0xa3   :  { %v131_v1 = vrot.slane %v130_v49, 2 }
  0xa5   :  { %v132_v50 = vadd.f32 %v131_v1, %v130_v49 }
  0xa7   :  { %v133_v51 = vrot.slane %v132_v50, 1 }
  0xa9   :  { %v134_v52 = vadd.f32 %v133_v51, %v132_v50 }
  0xab   :  { %245 = vpush %v134_v52 }
  0xb4   :  { %v210_v53 = vpop.xlane.xlu1 %209 }
  0xb5   :  { %v211_v54 = vrot.slane %v210_v53, 4 }
  0xb7   :  { %v212_v55 = vadd.f32 %v211_v54, %v210_v53 }
  0xb9   :  { %v213_v56 = vrot.slane %v212_v55, 2 }
  0xbb   :  { %v214_v57 = vadd.f32 %v213_v56, %v212_v55 }
  0xbd   :  { %v215_v58 = vrot.slane %v214_v57, 1 }
  0xbf   :  { %v216_v59 = vadd.f32 %v215_v58, %v214_v57 }
  0xc1   :  { %247 = vpush %v216_v59 }
  0xc2   :  { %s244_s0 = spop %243 }
  0xc3   :  { %61 = sst [smem:[#allocation2]] %s244_s0 }
  0xdc   :  { %s246_s1 = spop %245 }
  0xdd   :  { %137 = sst [smem:[#allocation2 + $0x1]] %s246_s1 }
  0xf2   :  { %s248_s24 = spop %247 }
  0xf3   :  { %219 = sst [smem:[#allocation2 + $0x2]] %s248_s24 }
  0xf4   :  { %228 = dma.smem_to_vmem %s280_s25, 16, %s226_s23, [#allocation3]  }
  0xf5   :  { %278 = dma.done.wait [#allocation3], 16  }
  0xf6   :  { %279 = vsyncadd [#allocation3], 4294967280 }
  0xf7   :  { %233 = sfence }
  0xf8   :  { %234 = vsyncpa [#allocation3], 1 }

</bundles_post_ra>
